<compile_context>
chip_gen: v5e
topology: v5e:2x2
jax: 0.10.0
libtpu: 0.0.40
codegen_flags: <defaults>
</compile_context>

<pallas_src>
import functools

import jax
import jax.numpy as jnp
from jax.experimental import pallas as pl
from jax.experimental.pallas import tpu as pltpu


def _cdiv(a, b):
    return (a + b - 1) // b


def _round_up(a, b):
    return _cdiv(a, b) * b


# ---------------------------------------------------------------------------
# Kernel factory: one fused matmul per (batch-block, lane-tile) grid step.
# ---------------------------------------------------------------------------
def _make_kernel(*, offs, K, TLq, n_lq_tiles, NB):
    """offs[k]: static start (>= 0) of tap k's window inside the padded input."""

    def kernel(x_ref, w_ref, b_ref, o_ref):
        # x_ref : (NB, C_in_pad, L_pad_in)   bf16  (full padded rows, resident per batch block)
        # w_ref : (stride*C_out, K*C_in_pad) bf16  (block-sparse fused weight, resident)
        # b_ref : (stride*C_out, 1)          f32   (resident)
        # o_ref : (NB, stride*C_out, TLq)    f32   (lane-dense output tile)
        w = w_ref[...]
        bvec = b_ref[...]
        for b in range(NB):                                    # static unroll
            slabs = []
            for k in range(K):                                 # static unroll
                if n_lq_tiles == 1:
                    start = offs[k]                            # fully static slice
                else:
                    # Lane-tiled case: 128-aligned dynamic base + static tap offset.
                    start = pl.multiple_of(pl.program_id(1) * TLq, 128) + offs[k]
                slabs.append(x_ref[b, :, pl.ds(start, TLq)])   # (C_in_pad, TLq)
            x2 = jnp.concatenate(slabs, axis=0) if K > 1 else slabs[0]
            o_ref[b] = (
                jnp.dot(w, x2, preferred_element_type=jnp.float32) + bvec)

    return kernel


# ---------------------------------------------------------------------------
# Wrapper: polyphase bookkeeping (all static) + one pallas_call + one transpose.
# ---------------------------------------------------------------------------
def conv_transpose1d_pallas(x, weight, bias, *, stride, padding, dilation):
    """x: (N, C_in, L_in); weight: (C_in, C_out, K); bias: (C_out,) or None.

    Returns (N, C_out, L_out) float32 with PyTorch ConvTranspose1d semantics.
    """
    N, C_in, L_in = x.shape
    assert weight.shape[0] == C_in
    _, C_out, K = weight.shape
    L_out = (L_in - 1) * stride - 2 * padding + dilation * (K - 1) + 1
    assert L_out > 0
    R = stride * C_out                        # fused output rows (phase-major)

    # --- static polyphase bookkeeping --------------------------------------
    # Output l = q*stride + r takes tap k iff r == (k*dilation - padding) % stride,
    # reading input i = q + o_k with o_k = (r_k + padding - k*dilation) // stride.
    phase_of = [(k * dilation - padding) % stride for k in range(K)]
    off_of = [(phase_of[k] + padding - k * dilation) // stride for k in range(K)]
    Lq = _cdiv(L_out, stride)                 # per-phase output length
    min_off, max_off = min(off_of), max(off_of)
    pad_l = max(0, -min_off)

    # --- tiling (VMEM-budget driven) ----------------------------------------
    Lq_128 = _round_up(Lq, 128)
    tl_cap = max(128, ((4 << 20) // (4 * R)) // 128 * 128)   # ~4 MiB per out row-set
    TLq = min(Lq_128, tl_cap)
    Lq_pad = _round_up(Lq, TLq)
    n_lq_tiles = Lq_pad // TLq

    C_in_pad = _round_up(C_in, 2)             # keep bf16 sublane pairs aligned
    KC = K * C_in_pad

    # Padded input length so every tap window of every lane tile stays in bounds.
    L_need = max(pad_l + L_in, Lq_pad + max_off + pad_l)
    L_pad_in = _round_up(L_need, 128)

    # Batch blocking: largest divisor NB of N whose blocks fit a small VMEM budget
    # while keeping >= 2 grid steps (so both v7x TensorCores get work).
    NB = 1
    for nb in range(1, N + 1):
        if N % nb:
            continue
        blk_bytes = nb * (C_in_pad * L_pad_in * 2 + R * TLq * 4)
        if blk_bytes > (4 << 20) and nb > 1:
            continue
        if (N // nb) * n_lq_tiles < 2 and N * n_lq_tiles >= 2:
            continue
        NB = nb

    # --- operands ------------------------------------------------------------
    x_pad = jnp.pad(
        x, ((0, 0), (0, C_in_pad - C_in), (pad_l, L_pad_in - pad_l - L_in))
    ).astype(jnp.bfloat16)                    # (N, C_in_pad, L_pad_in)

    # Block-sparse fused weight: row = r*C_out + co, col = k*C_in_pad + ci.
    w_all = jnp.zeros((stride, C_out, K, C_in_pad), jnp.float32)
    for k in range(K):
        w_all = w_all.at[phase_of[k], :, k, :C_in].set(weight[:, :, k].T)
    w_all = w_all.reshape(R, KC).astype(jnp.bfloat16)

    b_vec = bias if bias is not None else jnp.zeros((C_out,), jnp.float32)
    b_all = jnp.tile(b_vec.astype(jnp.float32), (stride,)).reshape(R, 1)

    offs = tuple(o + pad_l for o in off_of)   # static, all >= 0

    kernel = _make_kernel(offs=offs, K=K, TLq=TLq, n_lq_tiles=n_lq_tiles, NB=NB)

    grid = (N // NB, n_lq_tiles)
    cost = pl.CostEstimate(
        flops=2 * N * Lq_pad * R * KC,
        transcendentals=0,
        bytes_accessed=(x_pad.size * 2 + w_all.size * 2 + b_all.size * 4
                        + N * R * Lq_pad * 4),
    )

    out = pl.pallas_call(
        kernel,
        out_shape=jax.ShapeDtypeStruct((N, R, Lq_pad), jnp.float32),
        grid=grid,
        in_specs=[
            pl.BlockSpec((NB, C_in_pad, L_pad_in), lambda bi, t: (bi, 0, 0)),
            pl.BlockSpec((R, KC), lambda bi, t: (0, 0)),      # resident weight
            pl.BlockSpec((R, 1), lambda bi, t: (0, 0)),       # resident bias
        ],
        out_specs=pl.BlockSpec((NB, R, TLq), lambda bi, t: (bi, 0, t)),
        compiler_params=pltpu.CompilerParams(
            dimension_semantics=("parallel", "parallel")),
        cost_estimate=cost,
    )(x_pad, w_all, b_all)                    # (N, R, Lq_pad) f32

    # Exactly one XLA transpose+reshape: interleave phases (l = q*stride + r).
    y = out[:, :, :Lq].reshape(N, stride, C_out, Lq)
    y = jnp.transpose(y, (0, 2, 3, 1)).reshape(N, C_out, Lq * stride)
    return y[:, :, :L_out]


# ---------------------------------------------------------------------------
# Pure-JAX reference (direct scatter formulation of ConvTranspose1d).
# ---------------------------------------------------------------------------
def conv_transpose1d_ref(x, weight, bias, *, stride, padding, dilation):
    N, C_in, L_in = x.shape
    _, C_out, K = weight.shape
    L_out = (L_in - 1) * stride - 2 * padding + dilation * (K - 1) + 1
    out = jnp.zeros((N, C_out, L_out), jnp.float32)
    for i in range(L_in):
        for k in range(K):
            l = i * stride - padding + k * dilation
            if 0 <= l < L_out:
                out = out.at[:, :, l].add(
                    jnp.einsum("nc,cd->nd", x[:, :, i], weight[:, :, k]))
    if bias is not None:
        out = out + bias[None, :, None]
    return out


def _run_case(key, *, N, C_in, C_out, K, stride, padding, dilation, L_in, use_bias):
    kx, kw, kb = jax.random.split(key, 3)
    bound = 1.0 / ((C_in * K) ** 0.5)
    weight = jax.random.uniform(kw, (C_in, C_out, K), jnp.float32, -bound, bound)
    bias = (jax.random.uniform(kb, (C_out,), jnp.float32, -bound, bound)
            if use_bias else None)
    x = jax.random.normal(kx, (N, C_in, L_in), jnp.float32)

    conv_fn = jax.jit(functools.partial(
        conv_transpose1d_pallas, stride=stride, padding=padding, dilation=dilation))
    y = jax.block_until_ready(conv_fn(x, weight, bias))

    L_out = (L_in - 1) * stride - 2 * padding + dilation * (K - 1) + 1
    assert y.shape == (N, C_out, L_out), y.shape

    ref_fn = jax.jit(functools.partial(
        conv_transpose1d_ref, stride=stride, padding=padding, dilation=dilation))

    # Check 1: reference fed the same bf16-rounded operands (kernel layout/accum).
    xq = x.astype(jnp.bfloat16).astype(jnp.float32)
    wq = weight.astype(jnp.bfloat16).astype(jnp.float32)
    y_q = ref_fn(xq, wq, bias)
    assert jnp.allclose(y, y_q, atol=2e-3, rtol=2e-3), \
        float(jnp.max(jnp.abs(y - y_q)))

    # Check 2: full-precision semantics (bf16 MXU operands -> loose tolerance).
    y_f = ref_fn(x, weight, bias)
    assert jnp.allclose(y, y_f, atol=5e-2, rtol=5e-2), \
        float(jnp.max(jnp.abs(y - y_f)))


if __name__ == "__main__":
    key = jax.random.PRNGKey(0)
    k1, k2 = jax.random.split(key)
    # Benchmark-like small config: strided + padded + dilated.
    _run_case(k1, N=2, C_in=4, C_out=8, K=3,
              stride=2, padding=1, dilation=2, L_in=64, use_bias=True)
    # Second tiny config exercising taps in every phase, odd C_in, no bias.
    _run_case(k2, N=2, C_in=3, C_out=8, K=3,
              stride=2, padding=1, dilation=3, L_in=40, use_bias=False)
    print("KERNEL_OK")
</pallas_src>

<mosaic_0001>
module attributes {stable_mosaic.version = 11 : i64} {
  func.func @kernel(%arg0: i32, %arg1: i32, %arg2: memref<1x4x256xbf16, #tpu.memory_space<vmem>>, %arg3: memref<16x12xbf16, #tpu.memory_space<vmem>>, %arg4: memref<16x1xf32, #tpu.memory_space<vmem>>, %arg5: memref<1x16x128xf32, #tpu.memory_space<vmem>>) attributes {dimension_semantics = [#tpu.dimension_semantics<parallel>, #tpu.dimension_semantics<parallel>], iteration_bounds = array<i64: 2, 1>, scalar_prefetch = 0 : i64, scratch_operands = 0 : i64, tpu.core_type = #tpu.core_type<tc>, window_params = [{transform_indices = @transform_0, window_bounds = array<i64: 1, 4, 256>}, {pipeline_mode = #tpu.pipeline_mode<synchronous>, transform_indices = @transform_1, window_bounds = array<i64: 16, 12>}, {pipeline_mode = #tpu.pipeline_mode<synchronous>, transform_indices = @transform_2, window_bounds = array<i64: 16, 1>}, {transform_indices = @transform_3, window_bounds = array<i64: 1, 16, 128>}]} {
    %c0 = arith.constant 0 : index
    %c0_0 = arith.constant 0 : index
    %0 = vector.load %arg3[%c0, %c0_0] : memref<16x12xbf16, #tpu.memory_space<vmem>>, vector<16x12xbf16>
    %c0_1 = arith.constant 0 : index
    %c0_2 = arith.constant 0 : index
    %1 = vector.load %arg4[%c0_1, %c0_2] : memref<16x1xf32, #tpu.memory_space<vmem>>, vector<16x1xf32>
    %c0_3 = arith.constant 0 : index
    %c0_4 = arith.constant 0 : index
    %c2 = arith.constant 2 : index
    %2 = vector.load %arg2[%c0_3, %c0_4, %c2] : memref<1x4x256xbf16, #tpu.memory_space<vmem>>, vector<1x4x128xbf16>
    %3 = vector.shape_cast %2 : vector<1x4x128xbf16> to vector<4x128xbf16>
    %c0_5 = arith.constant 0 : index
    %c0_6 = arith.constant 0 : index
    %c1 = arith.constant 1 : index
    %4 = vector.load %arg2[%c0_5, %c0_6, %c1] : memref<1x4x256xbf16, #tpu.memory_space<vmem>>, vector<1x4x128xbf16>
    %5 = vector.shape_cast %4 : vector<1x4x128xbf16> to vector<4x128xbf16>
    %c0_7 = arith.constant 0 : index
    %c0_8 = arith.constant 0 : index
    %c0_9 = arith.constant 0 : index
    %6 = vector.load %arg2[%c0_7, %c0_8, %c0_9] : memref<1x4x256xbf16, #tpu.memory_space<vmem>>, vector<1x4x128xbf16>
    %7 = vector.shape_cast %6 : vector<1x4x128xbf16> to vector<4x128xbf16>
    %8 = tpu.concatenate %3, %5, %7 in 0 : vector<4x128xbf16>, vector<4x128xbf16>, vector<4x128xbf16> -> vector<12x128xbf16>
    %cst = arith.constant dense<0.000000e+00> : vector<16x128xf32>
    %9 = tpu.matmul %0, %8, %cst {dimension_numbers = #tpu.dot_dimension_numbers<[1], [0], [0], [1], [0, 0, 1, 1], [], []>} : vector<16x12xbf16>, vector<12x128xbf16>, vector<16x128xf32> -> vector<16x128xf32>
    %10 = vector.broadcast %1 : vector<16x1xf32> to vector<16x128xf32>
    %11 = arith.addf %9, %10 : vector<16x128xf32>
    %c0_10 = arith.constant 0 : index
    %c0_11 = arith.constant 0 : index
    %c0_12 = arith.constant 0 : index
    %12 = vector.load %arg5[%c0_10, %c0_11, %c0_12] : memref<1x16x128xf32, #tpu.memory_space<vmem>>, vector<1x16x128xf32>
    %13 = vector.shape_cast %12 : vector<1x16x128xf32> to vector<16x128xf32>
    %14 = vector.shape_cast %11 : vector<16x128xf32> to vector<1x16x128xf32>
    tpu.vector_store %arg5[%c0_10, %c0_11, %c0_12], %14 {strides = array<i32>} : memref<1x16x128xf32, #tpu.memory_space<vmem>>, vector<1x16x128xf32>,
    return
  }
  func.func @transform_0(%arg0: i32, %arg1: i32) -> (i32, i32, i32) {
    %c0_i32 = arith.constant 0 : i32
    %c0_i32_0 = arith.constant 0 : i32
    %c0_i32_1 = arith.constant 0 : i32
    return %arg0, %c0_i32, %c0_i32_0 : i32, i32, i32
  }
  func.func @transform_1(%arg0: i32, %arg1: i32) -> (i32, i32) {
    %c0_i32 = arith.constant 0 : i32
    %c0_i32_0 = arith.constant 0 : i32
    %c0_i32_1 = arith.constant 0 : i32
    return %c0_i32, %c0_i32_0 : i32, i32
  }
  func.func @transform_2(%arg0: i32, %arg1: i32) -> (i32, i32) {
    %c0_i32 = arith.constant 0 : i32
    %c0_i32_0 = arith.constant 0 : i32
    %c0_i32_1 = arith.constant 0 : i32
    return %c0_i32, %c0_i32_0 : i32, i32
  }
  func.func @transform_3(%arg0: i32, %arg1: i32) -> (i32, i32, i32) {
    %c0_i32 = arith.constant 0 : i32
    %c0_i32_0 = arith.constant 0 : i32
    return %arg0, %c0_i32, %arg1 : i32, i32, i32
  }
}

</mosaic_0001>

<bundles_post_ra>
// kernel: tile.8
= control target key start
LH: loop header
LB: loop body
LE: loop exit
PB: predicated region body
PF: predicated region fallthrough
CT: control target
= control target key end

     0   :  { %2 = vsyncpa [#allocation1], 0  ;;  %s48_s8 = smov [#allocation0]   ;;  %s65_s0 = inlined_call_operand.hbm [shape: f32[8], index: 0, kind: input, shape index: {}]   ;;  %s66_s1 = inlined_call_operand.vmem [shape: f32[2,8], index: 1, kind: output, shape index: {}]  }
   0x1   :  { %s8_s0 = sshll.u32 %s65_s0, 4  ;;  %s10_s9 = sshll.u32 %s48_s8, 4  ;;  %s9_s0 = int_to_ptr.hbm [resolvable:$true] %s8_s0  ;;  %s11_s9 = int_to_ptr.vmem [resolvable:$true] %s10_s9 }
   0x2   :  { %13 = dma.hbm_to_vmem [thread:$0]  %s9_s0, 16, %s11_s9, [#allocation1]  }
   0x3   :  { %46 = dma.done.wait [#allocation1], 16  }
   0x4   :  { %47 = vsyncadd [#allocation1], 4294967280  ;;  %v18_v0 = vld [vmem:[#allocation0] ss:$0 sm:$0xff] }
   0x5   :  { %19 = vst [vmem:[%s66_s1] sm:$0x3] %v18_v0 }
   0x6   :  { %20 = vsyncpa [#allocation1], 1 }

// kernel: tile.0
= control target key start
LH: loop header
LB: loop body
LE: loop exit
PB: predicated region body
PF: predicated region fallthrough
CT: control target
= control target key end

     0   :  { %s66_s8 = smov 125   ;;  %s67_s9 = smov 123   ;;  %vm7_vm0 = vcmask 7168   ;;  %s117_s0 = inlined_call_operand.vmem [shape: f32[2,8], index: 0, kind: input, shape index: {}]   ;;  %s118_s1 = inlined_call_operand.vmem [shape: f32[16,1], index: 1, kind: output, shape index: {}]  }
   0x1   :  { %v4_v0 = vld [vmem:[%s117_s0] sm:$0x3]  ;;  %s65_s0 = smov 127   ;;  %s68_s10 = smov 126  }
   0x2   :  { %5 = vst [vmem:[#allocation0] sm:$0x3] %v4_v0  ;;  %s69_s11 = smov 124   ;;  %s70_s12 = smov 122  }
   0x3   :  { %s71_s13 = smov 121  }
   0x9   :  { %v9_v1 = vld [vmem:[#allocation0] sm:$0x3]  }
   0xa   :  { %v21_v2 = vld [vmem:[#allocation0] sm:$0x3]   ;;  %10 = vrot.lane.b32.xlu0 %v9_v1, %s65_s0 }
   0xb   :  { %22 = vrot.lane.b32.xlu1 %v21_v2, %s66_s8  ;;  %v33_v3 = vld [vmem:[#allocation0] sm:$0x3]  }
   0xc   :  { %34 = vrot.lane.b32.xlu2 %v33_v3, %s67_s9  ;;  %v15_v4 = vld [vmem:[#allocation0] sm:$0x3]  }
   0xd   :  { %v27_v5 = vld [vmem:[#allocation0] sm:$0x3]  }
   0xe   :  { %v39_v6 = vld [vmem:[#allocation0] sm:$0x3]  }
   0xf   :  { %v45_v7 = vld [vmem:[#allocation0] sm:$0x3]  }
  0x10   :  { %v6_v8 = vld [vmem:[#allocation0] sm:$0x3]  }
  0x11   :  { %8 = vst.msk [vmem:[%s118_s1] ss:$8 sm:$0x3] %vm7_vm0, %v6_v8  }
  0x12   :  { %16 = vrot.lane.b32.xlu0 %v15_v4, %s68_s10 }
  0x13   :  { %28 = vrot.lane.b32.xlu1 %v27_v5, %s69_s11 }
  0x14   :  { %40 = vrot.lane.b32.xlu2 %v39_v6, %s70_s12 }
  0x1a   :  { %46 = vrot.lane.b32.xlu0 %v45_v7, %s71_s13 }
  0x66   :  { %v35_v9 = vpop.permute.xlu2 %34  }
  0x67   :  { %55 = vst.msk [vmem:[%s118_s1 + $0x5] ss:$8 sm:$0x3] %vm7_vm0, %v35_v9  }
  0x6e   :  { %v41_v10 = vpop.permute.xlu2 %40  }
  0x6f   :  { %56 = vst.msk [vmem:[%s118_s1 + $0x6] ss:$8 sm:$0x3] %vm7_vm0, %v41_v10  }
  0x7c   :  { %v11_v11 = vpop.permute.xlu0 %10  }
  0x7d   :  { %v23_v12 = vpop.permute.xlu1 %22   ;;  %51 = vst.msk [vmem:[%s118_s1 + $0x1] ss:$8 sm:$0x3] %vm7_vm0, %v11_v11  }
  0x7e   :  { %53 = vst.msk [vmem:[%s118_s1 + $0x3] ss:$8 sm:$0x3] %vm7_vm0, %v23_v12  }
  0x84   :  { %v17_v13 = vpop.permute.xlu0 %16  }
  0x85   :  { %v29_v14 = vpop.permute.xlu1 %28   ;;  %52 = vst.msk [vmem:[%s118_s1 + $0x2] ss:$8 sm:$0x3] %vm7_vm0, %v17_v13  }
  0x86   :  { %54 = vst.msk [vmem:[%s118_s1 + $0x4] ss:$8 sm:$0x3] %vm7_vm0, %v29_v14  }
  0x8c   :  { %v47_v15 = vpop.permute.xlu0 %46  }
  0x8d   :  { %57 = vst.msk [vmem:[%s118_s1 + $0x7] ss:$8 sm:$0x3] %vm7_vm0, %v47_v15  }

// kernel: conv_transpose1d_pallas.1
= control target key start
LH: loop header
LB: loop body
LE: loop exit
PB: predicated region body
PF: predicated region fallthrough
CT: control target
= control target key end

     0   :  { %s451_s12 = smov 0   ;;  %s453_s13 = smov 0   ;;  %s497_s0 = inlined_call_operand.vmem [shape: bf16[2,4,256], index: 0, kind: input, shape index: {}]   ;;  %s498_s1 = inlined_call_operand.vmem [shape: bf16[16,12], index: 1, kind: input, shape index: {}]   ;;  %s499_s2 = inlined_call_operand.vmem [shape: f32[16,1], index: 2, kind: input, shape index: {}]   ;;  %s500_s3 = inlined_call_operand.vmem [shape: f32[2,16,128], index: 3, kind: output, shape index: {}]  }
   0x1   :  { %s455_s14 = smov 0  }
   0x2 LB: > { %s25_s15 = sadd.s32 1, %s421_s13  ;;  %p358_p0 = scmp.ge.s32.totalorder %s425_s14, 1  ;;  %s425_s14 = sphi %s455_s14, %s13_s14   ;;  %s421_s13 = sphi %s453_s13, %s502_s13   ;;  %s417_s12 = sphi %s451_s12, %s501_s12  }
   0x3   : > { %p27_p1 = scmp.ge.s32.totalorder %s25_s15, 2  ;;  %p151_p2 = scmp.lt.s32.totalorder %s425_s14, 3 }
   0x5   : > { %s504_s15 = smov (%p27_p1, %s25_s15), 0  ;;  %p152_p3 = pnand %p358_p0, %p151_p2 }
   0x6   : > { %p178_p4 = scmp.lt.s32.totalorder (!%p152_p3), %s417_s12, 1  ;;  %s427_s20 = smov (!%p152_p3), 1  }
   0x7   : > { %155 = sbr.rel (%p152_p3) target bundleno = 413 (0x19d), region = 32  ;;  %s428_s21 = smov (!%p152_p3), 2  }
   0x8   : > { %s429_s22 = smov (!%p152_p3), 126  }
   0xc   : > { %s506_s12 = smov (!%p178_p4, %s417_s12), 1  ;;  %vm221_vm0 = vcmask 1041408   ;;  %vm212_vm1 = vcmask 7168   ;;  %vm226_vm2 = vcmask 1043456   ;;  %v195_v15 = vld [vmem:[%s499_s2 + $0x8] sm:$0xff]  ;;  %v194_v16 = vld [vmem:[%s499_s2] sm:$0xff] }
   0xd   : > { %s370_s16 = sshll.u32 %s506_s12, 2  ;;  %v430_v17 = vmov 0   ;;  %vm251_vm3 = vcmask 1031168   ;;  %vm257_vm4 = vcmask 1045504   ;;  %v372_v22 = vld [vmem:[%s498_s1] sm:$0xff]  ;;  %vm253_vm5 = vcmask 97280  }
   0xe   : > { %s182_s19 = scalar_lea.vmem %s497_s0, %s370_s16  ;;  %402 = vset.pattern.permute.xlu0 %v430_v17  ;;  %401 = vset.pattern.permute.xlu2 %v430_v17  ;;  %s371_s29 = sshll.u32 %s506_s12, 4 }
   0xf   : > { %v196_v0 = vld [vmem:[%s182_s19] sm:$0xf]  ;;  %s190_s5 = scalar_lea.vmem %s500_s3, %s371_s29 }
  0x10   : > { %199 = vst [vmem:[#allocation1] ss:$4 sm:$0xff] %v196_v0  ;;  %v197_v3 = vld [vmem:[%s182_s19] sm:$0x3] }
  0x17   : > { %v200_v1 = vld.sshfl [vmem:[#allocation1] sm:$0xff pattern:$0x73625140]  ;;  %v201_v2 = vld.sshfl [vmem:[#allocation1 + $0x8] sm:$0xff pattern:$0x73625140] }
  0x18   : > { %203 = vst [vmem:[#allocation1 + $0x1] ss:$4 sm:$0xff] %v196_v0 }
  0x1f   : > { %v204_v4 = vld.sshfl [vmem:[#allocation1] sm:$0xff pattern:$0x73625140]  ;;  %v206_v5 = vld.sshfl [vmem:[#allocation1 + $0x8] sm:$0xff pattern:$0x73625140] }
  0x20   : > { %208 = vrot.lane.b32.xlu0 %v204_v4, %s427_s20  ;;  %216 = vst [vmem:[#allocation1 + $0x2] ss:$4 sm:$0xff] %v197_v3 }
  0x27   : > { %v217_v6 = vld.sshfl [vmem:[#allocation1] sm:$0xff pattern:$0x73625140] }
  0x28   : > { %210 = vrot.lane.b32.xlu0 %v206_v5, %s427_s20  ;;  %219 = vrot.lane.b32.xlu1 %v217_v6, %s428_s21 }
  0x30   : > { %237 = vperm.xlu0 %402, %v195_v15  }
  0x92   : > { %v209_v7 = vpop.permute.xlu0 %208 }
  0x93   : > { %v223_v8 = vsel %vm221_vm0, %v200_v1, %v209_v7 }
  0x9a   : > { %v211_v9 = vpop.permute.xlu0 %210  ;;  %v220_v10 = vpop.permute.xlu1 %219 }
  0x9b   : > { %v213_v11 = vsel %vm212_vm1, %v209_v7, %v211_v9  ;;  %v228_v12 = vsel %vm226_vm2, %v223_v8, %v220_v10 }
  0x9c   : > { %247 = vrot.lane.b32.xlu1 %v228_v12, %s429_s22  ;;  %v225_v13 = vsel %vm221_vm0, %v201_v2, %v213_v11 }
  0x9d   : > { %v229_v14 = vsel %vm226_vm2, %v225_v13, %v220_v10 }
  0x9e   : > { %249 = vrot.lane.b32.xlu2 %v229_v14, %s429_s22 }
  0xa2   : > { %v238_v26 = vpop.permute.xlu0 %237 }
  0xa6   : > { %232 = vperm.xlu2 %401, %v194_v16  }
  0xf8   : > { %v250_v18 = vpop.permute.xlu2 %249 }
 0x100   : > { %v233_v23 = vpop.permute.xlu2 %232 }
 0x10e   : > { %v248_v19 = vpop.permute.xlu1 %247 }
 0x10f   : > { %v252_v20 = vsel %vm251_vm3, %v248_v19, %v250_v18 }
 0x110   : > { %v259_v21 = vsel %vm257_vm4, %v252_v20, 0 }
 0x111   : > { %268 = vmatpush.bf16.msra.mxu0 %v259_v21 }
 0x114   : > { %367 = vmatmul.msk.bf16.vlgmr.msra.gmra.mxu0 %vm253_vm5, %v372_v22 }
 0x191   : > { %v270_v24 = vpop.f32.mrf.mxu0 }
 0x192   : > { %v271_v25 = vadd.f32 %v270_v24, %v233_v23 }
 0x194   : > { %275 = vst [vmem:[%s190_s5] sm:$0xff] %v271_v25 }
 0x199   : > { %v272_v27 = vpop.f32.mrf.mxu0 }
 0x19a   : > { %v273_v28 = vadd.f32 %v272_v27, %v238_v26 }
 0x19c   : > { %276 = vst [vmem:[%s190_s5 + $0x8] sm:$0xff] %v273_v28 }
 0x19d PF: > { %s13_s14 = sadd.s32 1, %s425_s14   ;;  %s501_s12 = smov %s421_s13 }
 0x19e   : > { %p10_p5 = scmp.ge.s32.totalorder %s13_s14, 4   ;;  %s502_s13 = smov %s504_s15 }
 0x1a0   :  { %12 = sbr.rel (!%p10_p5) target bundleno = 2 (0x2), region = 64 }

</bundles_post_ra>
